<compile_context>
chip_gen: v7x
topology: tpu7x:2x2x1
jax: 0.10.0
libtpu: 0.0.40
codegen_flags: <defaults>
</compile_context>

<pallas_src>
import functools

import jax
import jax.numpy as jnp
from jax import lax
from jax.experimental import pallas as pl
from jax.experimental.pallas import tpu as pltpu


_VMEM_TILE_BUDGET = 40 * 1024 * 1024    # per-step working-set cap (fits v7x's 64 MiB VMEM)
_VMEM_LIMIT_BYTES = 48 * 1024 * 1024    # scoped-VMEM limit handed to Mosaic
_SMALL_TABLE_BYTES = 4 * 1024 * 1024    # keep the token table VMEM-resident below this
_SMALL_TABLE_MAX_VOCAB = 1024           # one-hot width cap for the VMEM-resident path


def _pick_tile(seq_len, per_row_bytes, fixed_bytes, max_tile=512):
    """Largest sequence tile (multiple of 8 dividing S, or S itself) fitting the budget."""
    cands = set()
    if seq_len <= max_tile:
        cands.add(seq_len)
    hi = min(max_tile, seq_len)
    for ts in range(hi - hi % 8, 7, -8):
        if seq_len % ts == 0:
            cands.add(ts)
    if not cands:
        return seq_len  # fall back to whole sequence (full-dim BlockSpec exemption)
    for ts in sorted(cands, reverse=True):
        if fixed_bytes + ts * per_row_bytes <= _VMEM_TILE_BUDGET:
            return ts
    return min(cands)


# ---------------------------------------------------------------------------
# Small-vocab path: token table fully resident in VMEM, gather = one-hot matmul.
# ---------------------------------------------------------------------------
def _onehot_embedding_kernel(ids_ref, tok_ref, pos_ref, out_ref):
    """ids_ref: VMEM (1, TS, 1) int32; tok_ref: VMEM (V, D); pos_ref: VMEM (TS, D)."""
    ids_col = ids_ref[0]                                        # (TS, 1) int32
    tile = ids_col.shape[0]
    vocab = tok_ref.shape[0]
    iota_v = lax.broadcasted_iota(jnp.int32, (tile, vocab), 1)  # (TS, V)
    one_hot = (ids_col == iota_v).astype(tok_ref.dtype)         # exact row selector
    rows = jnp.dot(one_hot, tok_ref[...], preferred_element_type=jnp.float32)
    out_ref[0, :, :] = rows.astype(out_ref.dtype) + pos_ref[...]


# ---------------------------------------------------------------------------
# Large-vocab path: HBM-resident table, double-buffered per-row DMA gather.
# ---------------------------------------------------------------------------
def _dma_gather_embedding_kernel(ids_ref, tok_hbm, pos_ref, out_ref, gather_buf, sem,
                                 *, tile, seq_len, unroll):
    """ids_ref: SMEM (B*S,) int32 (scalar prefetch, pre-clamped); tok_hbm: HBM (V, D);
    pos_ref: VMEM (TS, D); out_ref: VMEM (1, TS, D);
    gather_buf: VMEM (2, TS, D); sem: DMA semaphores (2,) — one shared sem per slot."""
    t = pl.program_id(0)
    b = pl.program_id(1)
    num_b = pl.num_programs(1)
    slot = b % 2

    def issue_rows(batch_row, dst_slot):
        base = batch_row * seq_len + t * tile

        def body(j, carry):
            tid = ids_ref[base + j]
            pltpu.make_async_copy(
                tok_hbm.at[pl.ds(tid, 1), :],
                gather_buf.at[dst_slot, pl.ds(j, 1), :],
                sem.at[dst_slot],
            ).start()
            return carry

        lax.fori_loop(0, tile, body, 0, unroll=unroll)

    # Prime the pipeline at the first batch row of this t-chunk (megacore-safe: the
    # b axis is "arbitrary", so every core starts its chunk at b == 0).
    @pl.when(b == 0)
    def _prime():
        issue_rows(b, slot)

    # Look one batch row ahead (same t) into the other slot before waiting.
    @pl.when(b + 1 < num_b)
    def _lookahead():
        issue_rows(b + 1, 1 - slot)

    # One whole-slot wait: every row copy signalled the same semaphore, so a single
    # descriptor sized to the full (TS, D) slab retires all of them.
    pltpu.make_async_copy(
        tok_hbm.at[pl.ds(0, tile), :],
        gather_buf.at[slot],
        sem.at[slot],
    ).wait()

    # One whole-tile add + one dense lane-full store.
    out_ref[0, :, :] = gather_buf[slot] + pos_ref[...]


# ---------------------------------------------------------------------------
# Wrapper
# ---------------------------------------------------------------------------
def transformer_embedding(ids, tok_table, pos_table_full, *, max_tile=512,
                          use_vmem_table=None):
    """ids: (B, S) int; tok_table: (V, D); pos_table_full: (max_len, D)."""
    B, S = ids.shape
    V, D = tok_table.shape
    itemsize = jnp.dtype(tok_table.dtype).itemsize
    assert pos_table_full.shape[0] >= S and pos_table_full.shape[1] == D

    # Pre-cast the positional slice to the token dtype (no mixed-dtype VPU add,
    # halves pos traffic for bf16 models).  Clamp ids once here instead of per row
    # in the kernel (OOB-safe gather; see TODO above).
    pos_table = pos_table_full[:S, :].astype(tok_table.dtype)
    ids = jnp.clip(ids.astype(jnp.int32), 0, V - 1)

    if use_vmem_table is None:
        use_vmem_table = (V * D * itemsize <= _SMALL_TABLE_BYTES
                          and V <= _SMALL_TABLE_MAX_VOCAB)

    if use_vmem_table:
        # VMEM per tile row: pos(x2) + out(x2) blocks + one-hot row + f32 row.
        per_row = (4 * D + V) * itemsize + 4 * D
        fixed = 2 * V * D * itemsize           # table (double-buffered, constant index)
        TS = _pick_tile(S, per_row, fixed, max_tile=max_tile)
        n_t = S // TS
        ids3 = ids.reshape(B * n_t, TS, 1)     # row index = b * n_t + t

        out = pl.pallas_call(
            _onehot_embedding_kernel,
            out_shape=jax.ShapeDtypeStruct((B, S, D), tok_table.dtype),
            grid_spec=pltpu.PrefetchScalarGridSpec(
                num_scalar_prefetch=0,
                grid=(n_t, B),                 # t outer, b inner: pos tile stays resident
                in_specs=[
                    pl.BlockSpec((1, TS, 1), lambda t, b: (b * n_t + t, 0, 0)),
                    pl.BlockSpec((V, D), lambda t, b: (0, 0)),   # whole table in VMEM
                    pl.BlockSpec((TS, D), lambda t, b: (t, 0)),
                ],
                out_specs=pl.BlockSpec((1, TS, D), lambda t, b: (b, t, 0)),
            ),
            compiler_params=pltpu.CompilerParams(
                dimension_semantics=("parallel", "parallel"),
                vmem_limit_bytes=_VMEM_LIMIT_BYTES,
            ),
        )(ids3, tok_table, pos_table)
        return out

    # Large-vocab path: HBM-resident table, per-row DMA gather.
    per_row = 6 * D * itemsize                 # gather dbuf(2) + pos(2) + out(2)
    TS = _pick_tile(S, per_row, 0, max_tile=max_tile)
    n_t = S // TS
    assert V >= TS, "DMA-gather path assumes vocab_size >= sequence tile"
    ids_flat = ids.reshape(B * S)              # flat 1-D SMEM (no 2-D SMEM padding blowup)

    kernel = functools.partial(_dma_gather_embedding_kernel, tile=TS, seq_len=S,
                               unroll=min(TS, 8))
    out = pl.pallas_call(
        kernel,
        out_shape=jax.ShapeDtypeStruct((B, S, D), tok_table.dtype),
        grid_spec=pltpu.PrefetchScalarGridSpec(
            # ids go through scalar prefetch because the cross-step double buffer needs
            # lookahead into the NEXT tile's ids (a per-tile blocked SMEM input would
            # only expose the current tile).
            num_scalar_prefetch=1,
            grid=(n_t, B),                     # t outer, b inner: pos tile stays resident
            in_specs=[
                pl.BlockSpec(memory_space=pl.ANY),                     # table stays in HBM
                pl.BlockSpec((TS, D), lambda t, b, ids_p: (t, 0)),     # pos tile
            ],
            out_specs=pl.BlockSpec((1, TS, D), lambda t, b, ids_p: (b, t, 0)),
            scratch_shapes=[
                pltpu.VMEM((2, TS, D), tok_table.dtype),   # double-buffered gather slab
                pltpu.SemaphoreType.DMA((2,)),             # one shared sem per slot
            ],
        ),
        compiler_params=pltpu.CompilerParams(
            # b must stay sequential per core (cross-b double buffering); the outer
            # n_t axis carries megacore parallelism on v7x.
            dimension_semantics=("parallel", "arbitrary"),
            vmem_limit_bytes=_VMEM_LIMIT_BYTES,
        ),
    )(ids_flat, tok_table, pos_table)
    return out


# ---------------------------------------------------------------------------
# Parameter builders (match the PyTorch module's init)
# ---------------------------------------------------------------------------
def make_sinusoidal_table(max_len, d_model, dtype=jnp.float32):
    """Standard transformer positional encoding (max_len, d_model)."""
    pos = jnp.arange(max_len, dtype=jnp.float32)[:, None]              # (L, 1)
    two_i = jnp.arange(0, d_model, 2, dtype=jnp.float32)[None, :]      # (1, D/2)
    angle = pos / jnp.power(10000.0, two_i / d_model)                  # (L, D/2)
    pe = jnp.zeros((max_len, d_model), dtype=jnp.float32)
    pe = pe.at[:, 0::2].set(jnp.sin(angle))
    pe = pe.at[:, 1::2].set(jnp.cos(angle))
    return pe.astype(dtype)


def make_token_table(key, vocab_size, d_model, pad_idx, dtype=jnp.float32):
    """nn.Embedding default init N(0,1), with padding_idx row zeroed."""
    w = jax.random.normal(key, (vocab_size, d_model), dtype=jnp.float32)
    w = w.at[pad_idx, :].set(0.0)
    return w.astype(dtype)


if __name__ == "__main__":
    # Small shapes consistent with the module.
    vocab_size, d_model, max_len, pad_idx = 50, 32, 16, 0
    batch, seq = 2, 8

    key = jax.random.PRNGKey(0)
    k_tok, k_ids, k_tok2, k_ids2 = jax.random.split(key, 4)

    # --- small-vocab (VMEM-resident) path ---
    tok_table = make_token_table(k_tok, vocab_size, d_model, pad_idx)
    pos_table_full = make_sinusoidal_table(max_len, d_model)
    ids = jax.random.randint(k_ids, (batch, seq), 0, vocab_size, dtype=jnp.int32)

    out = transformer_embedding(ids, tok_table, pos_table_full)
    out = jax.block_until_ready(out)

    ref = jnp.take(tok_table, ids, axis=0) + pos_table_full[:seq, :][None, :, :]
    assert out.shape == (batch, seq, d_model)
    assert jnp.allclose(out, ref, atol=1e-5, rtol=1e-5), "small-path mismatch vs reference"

    # --- large-vocab (HBM DMA-gather) path, forced, to exercise that code too ---
    V2, D2, S2 = 512, 128, 16
    tok2 = make_token_table(k_tok2, V2, D2, pad_idx)
    pos2 = make_sinusoidal_table(S2, D2)
    ids2 = jax.random.randint(k_ids2, (batch, S2), 0, V2, dtype=jnp.int32)

    out2 = transformer_embedding(ids2, tok2, pos2, use_vmem_table=False)
    out2 = jax.block_until_ready(out2)

    ref2 = jnp.take(tok2, ids2, axis=0) + pos2[None, :, :]
    assert out2.shape == (batch, S2, D2)
    assert jnp.allclose(out2, ref2, atol=1e-5, rtol=1e-5), "gather-path mismatch vs reference"

    print("KERNEL_OK")
</pallas_src>

<mosaic_0001>
module attributes {stable_mosaic.version = 11 : i64} {
  func.func @_onehot_embedding_kernel(%arg0: i32, %arg1: i32, %arg2: memref<1x8x1xi32, #tpu.memory_space<vmem>>, %arg3: memref<50x32xf32, #tpu.memory_space<vmem>>, %arg4: memref<8x32xf32, #tpu.memory_space<vmem>>, %arg5: memref<1x8x32xf32, #tpu.memory_space<vmem>>) attributes {dimension_semantics = [#tpu.dimension_semantics<parallel>, #tpu.dimension_semantics<parallel>], iteration_bounds = array<i64: 1, 2>, scalar_prefetch = 0 : i64, scratch_operands = 0 : i64, tpu.core_type = #tpu.core_type<tc>, window_params = [{transform_indices = @transform_0, window_bounds = array<i64: 1, 8, 1>}, {pipeline_mode = #tpu.pipeline_mode<synchronous>, transform_indices = @transform_1, window_bounds = array<i64: 50, 32>}, {transform_indices = @transform_2, window_bounds = array<i64: 8, 32>}, {transform_indices = @transform_3, window_bounds = array<i64: 1, 8, 32>}]} {
    %c0 = arith.constant 0 : index
    %c0_0 = arith.constant 0 : index
    %c0_1 = arith.constant 0 : index
    %0 = vector.load %arg2[%c0, %c0_0, %c0_1] : memref<1x8x1xi32, #tpu.memory_space<vmem>>, vector<1x8x1xi32>
    %1 = vector.shape_cast %0 : vector<1x8x1xi32> to vector<8x1xi32>
    %2 = tpu.iota {dimensions = array<i32: 1>} : vector<8x50xi32>
    %3 = vector.broadcast %1 : vector<8x1xi32> to vector<8x50xi32>
    %4 = arith.cmpi eq, %3, %2 : vector<8x50xi32>
    %5 = arith.extui %4 : vector<8x50xi1> to vector<8x50xi32>
    %6 = arith.sitofp %5 : vector<8x50xi32> to vector<8x50xf32>
    %c0_2 = arith.constant 0 : index
    %c0_3 = arith.constant 0 : index
    %7 = vector.load %arg3[%c0_2, %c0_3] : memref<50x32xf32, #tpu.memory_space<vmem>>, vector<50x32xf32>
    %cst = arith.constant dense<0.000000e+00> : vector<8x32xf32>
    %8 = tpu.matmul %6, %7, %cst {dimension_numbers = #tpu.dot_dimension_numbers<[1], [0], [0], [1], [0, 0, 1, 1], [], []>} : vector<8x50xf32>, vector<50x32xf32>, vector<8x32xf32> -> vector<8x32xf32>
    %c0_4 = arith.constant 0 : index
    %c0_5 = arith.constant 0 : index
    %9 = vector.load %arg4[%c0_4, %c0_5] : memref<8x32xf32, #tpu.memory_space<vmem>>, vector<8x32xf32>
    %10 = arith.addf %8, %9 : vector<8x32xf32>
    %c0_6 = arith.constant 0 : index
    %c0_7 = arith.constant 0 : index
    %c0_8 = arith.constant 0 : index
    %11 = vector.load %arg5[%c0_6, %c0_7, %c0_8] : memref<1x8x32xf32, #tpu.memory_space<vmem>>, vector<1x8x32xf32>
    %12 = vector.shape_cast %11 : vector<1x8x32xf32> to vector<8x32xf32>
    %13 = vector.shape_cast %10 : vector<8x32xf32> to vector<1x8x32xf32>
    tpu.vector_store %arg5[%c0_6, %c0_7, %c0_8], %13 {strides = array<i32>} : memref<1x8x32xf32, #tpu.memory_space<vmem>>, vector<1x8x32xf32>,
    return
  }
  func.func @transform_0(%arg0: i32, %arg1: i32) -> (i32, i32, i32) {
    %c1_i32 = arith.constant 1 : i32
    %0 = arith.muli %arg1, %c1_i32 : i32
    %1 = arith.addi %0, %arg0 : i32
    %c0_i32 = arith.constant 0 : i32
    %c0_i32_0 = arith.constant 0 : i32
    %c0_i32_1 = arith.constant 0 : i32
    return %1, %c0_i32, %c0_i32_0 : i32, i32, i32
  }
  func.func @transform_1(%arg0: i32, %arg1: i32) -> (i32, i32) {
    %c0_i32 = arith.constant 0 : i32
    %c0_i32_0 = arith.constant 0 : i32
    %c0_i32_1 = arith.constant 0 : i32
    return %c0_i32, %c0_i32_0 : i32, i32
  }
  func.func @transform_2(%arg0: i32, %arg1: i32) -> (i32, i32) {
    %c0_i32 = arith.constant 0 : i32
    %c0_i32_0 = arith.constant 0 : i32
    return %arg0, %c0_i32 : i32, i32
  }
  func.func @transform_3(%arg0: i32, %arg1: i32) -> (i32, i32, i32) {
    %c0_i32 = arith.constant 0 : i32
    %c0_i32_0 = arith.constant 0 : i32
    return %arg1, %arg0, %c0_i32 : i32, i32, i32
  }
}

</mosaic_0001>

<bundles_post_ra>
// kernel: tpu_custom_call.1
= control target key start
LH: loop header
LB: loop body
LE: loop exit
PB: predicated region body
PF: predicated region fallthrough
CT: control target
= control target key end

     0   :  { %8 = vsyncpa [#allocation3], 0  ;;  %s749_s0 = inlined_call_operand.vmem [shape: s32[2,8,1], index: 0, kind: input, shape index: {}]   ;;  %s750_s1 = inlined_call_operand.vmem [shape: f32[50,32], index: 1, kind: input, shape index: {}]   ;;  %s751_s2 = inlined_call_operand.vmem [shape: f32[8,32], index: 2, kind: input, shape index: {}]   ;;  %s752_s3 = inlined_call_operand.hbm [shape: f32[2,8,32], index: 3, kind: output, shape index: {}]  }
   0x1   :  { %10 = vsyncpa [#allocation3 + $0x1], 0  ;;  %s613_s12 = smov 0   ;;  %s615_s13 = smov 0  }
   0x2   :  { %s617_s14 = smov 0   ;;  %s619_s15 = smov 0  }
   0x3   :  { %s621_s16 = smov 0   ;;  %s623_s17 = smov 0  }
   0x4 LB: > { %s399_s18 = sadd.s32 4294967295, %s586_s17   ;;  %s400_s19 = sadd.s32 4294967294, %s586_s17   ;;  %s586_s17 = sphi %s623_s17, %s16_s17   ;;  %s582_s16 = sphi %s621_s16, %s759_s16   ;;  %s578_s15 = sphi %s619_s15, %s758_s15   ;;  %s574_s14 = sphi %s617_s14, %s757_s14   ;;  %s570_s13 = sphi %s615_s13, %s756_s13   ;;  %s566_s12 = sphi %s613_s12, %s755_s12  }
   0x5   : > { %s25_s20 = sadd.s32 1, %s582_s16  ;;  %s112_s21 = sadd.s32 1, %s574_s14 }
   0x6   : > { %p26_p0 = scmp.ge.s32.totalorder %s25_s20, 2  ;;  %p122_p1 = scmp.ne.s32.totalorder %s574_s14, %s570_s13 }
   0x7   : > { %p123_p2 = scmp.eq.s32.totalorder %s399_s18, 1  ;;  %p128_p3 = scmp.ne.s32.totalorder %s570_s13, %s566_s12 }
   0x8   : > { %s761_s20 = smov (%p26_p0, %s25_s20), 0  ;;  %p129_p5 = scmp.eq.s32.totalorder %s400_s19, 1 }
   0x9   : > { %p653_p4 = por %p123_p2, %p122_p1  ;;  %s107_s23 = ssub.s32 %s582_s16, %s761_s20 }
   0xa   : > { %p404_p6 = scmp.ge.s32.totalorder %s586_s17, 1  ;;  %p110_p7 = scmp.eq.s32.totalorder %s107_s23, 0 }
   0xb   : > { %p660_p8 = por %p129_p5, %p128_p3  ;;  %p166_p9 = scmp.lt.s32.totalorder %s586_s17, 3 }
   0xc   : > { %s666_s25 = scalar_select %p110_p7, %s574_s14, %s112_s21  }
   0xd   : > { %p167_p10 = pnand %p404_p6, %p166_p9 }
   0xe   : > { %p195_p11 = scmp.lt.s32.totalorder (!%p167_p10), %s578_s15, 1  ;;  %v213_v0 = vld [vmem:[%s750_s1] sm:$0xff] (!%p167_p10)  ;;  %v214_v1 = vld [vmem:[%s750_s1 + $0x8] sm:$0xff] (!%p167_p10)  ;;  %v215_v2 = vld [vmem:[%s750_s1 + $0x10] sm:$0xff] (!%p167_p10)  ;;  %v588_v3 = vmov (!%p167_p10), 0   ;;  %v589_v4 = vmov (!%p167_p10), 0.0|0.0   ;;  %v205_v14 = vlaneseq (!%p167_p10) }
   0xf   : > { %170 = sbr.rel (%p167_p10) target bundleno = 385 (0x181), region = 32  ;;  %507 = vset.pattern.permute.xlu0 (!%p167_p10), %v588_v3  ;;  %439 = vmatprep.subr.bf16.mxu0 (!%p167_p10), %v589_v4  ;;  %v440_v5 = vpack.c.bf16 (!%p167_p10), %v214_v1, %v213_v0  ;;  %v216_v6 = vld [vmem:[%s750_s1 + $0x18] sm:$0xff] (!%p167_p10)  ;;  %v217_v8 = vld [vmem:[%s750_s1 + $0x20] sm:$0xff] (!%p167_p10)  ;;  %v218_v9 = vld [vmem:[%s750_s1 + $0x28] sm:$0xff] (!%p167_p10)  ;;  %vm590_vm0 = vmmov (!%p167_p10), 0   ;;  %v591_v12 = vmov (!%p167_p10), 0.0  }
  0x10   : > { %v443_v7 = vpack.c.bf16 (!%p167_p10), %v216_v6, %v215_v2  ;;  %v446_v11 = vpack.c.bf16 (!%p167_p10), %v218_v9, %v217_v8  ;;  %436 = vmatprep.mubr.msk.f32.mxu0 (!%p167_p10), %vm590_vm0, %v591_v12  ;;  %v219_v13 = vld [vmem:[%s750_s1 + $0x30] sm:$0x3] (!%p167_p10)  ;;  %vm225_vm1 = vcmask (!%p167_p10), 1041408   ;;  %v206_v15 = vand.u32 (!%p167_p10), 127, %v205_v14  ;;  %s191_s28 = sand.u32 (!%p167_p10), 1, %s570_s13   ;;  %v220_v18 = vld [vmem:[%s751_s2] sm:$0xff] (!%p167_p10) }
  0x11   : > { %441 = vmatpush3.bf16.msra.mxu0 (!%p167_p10), %v440_v5  ;;  %vm221_vm2 = vcmask (!%p167_p10), 408576   ;;  %s405_s29 = sshll.u32 (!%p167_p10), %s191_s28, 3  ;;  %s411_s5 = sshll.u32 (!%p167_p10), %s578_s15, 7  ;;  %vm299_vm4 = vcmask (!%p167_p10), 261120  }
  0x12   : > { %442 = vmatprep.subr.bf16.mxu0 (!%p167_p10), %v589_v4  ;;  %s193_s6 = scalar_lea.vmem (!%p167_p10), [#allocation2], %s405_s29  ;;  %s702_s10 = scalar_lea.hbm (!%p167_p10), %s752_s3, %s411_s5 }
  0x13   : > { %s302_s11 = scalar_lea.sflag (!%p167_p10), [#allocation3], %s191_s28 }
  0x15   : > { %444 = vmatpush3.bf16.msra.mxu0 (!%p167_p10), %v443_v7 }
  0x16   : > { %s196_s7 = scalar_select %p195_p11, %s578_s15, 1  ;;  %445 = vmatprep.subr.bf16.mxu0 %v589_v4 }
  0x17   : > { %s592_s15 = smov [#allocation2]  }
  0x18   : > { %s406_s8 = sshll.u32 %s196_s7, 3  ;;  %s316_s7 = sshll.u32 %s193_s6, 4  ;;  %s704_s7 = int_to_ptr.vmem [resolvable:$true] %s316_s7 }
  0x19   : > { %s198_s23 = scalar_lea.vmem %s749_s0, %s406_s8  ;;  %447 = vmatpush3.bf16.msra.mxu0 %v446_v11  ;;  %s508_s18 = scalar_lea.vmem %s704_s7, 128 }
  0x1a   : > { %v204_v10 = vld [vmem:[%s198_s23] sm:$0xff]  ;;  %434 = vmatprep.subr.mxu0 %v591_v12  ;;  %p509_p12 = scmp.ne.s32.totalorder %s704_s7, %s508_s18  ;;  %s512_s19 = sshll.u32 %s592_s15, 4  ;;  %s513_s19 = int_to_ptr.vmem [resolvable:$false] %s512_s19 }
  0x1b   : > { %208 = vperm.xlu0 %507, %v204_v10   ;;  %s514_s21 = scalar_lea.vmem %s513_s19, 256  ;;  %p515_p1 = scmp.lt.s32.totalorder %s704_s7, %s513_s19 }
  0x1c   : > { %p510_p13 = pnand %p509_p12, %p653_p4  ;;  %p516_p2 = scmp.lt.s32.totalorder %s514_s21, %s508_s18 }
  0x1d   : > { %435 = vmatpush3.msk.msra.mxu0 %vm225_vm1, %v219_v13 }
  0x1e   : > { %p511_p0 = pneg %p510_p13  ;;  %p517_p3 = por %p516_p2, %p515_p1 }
  0x20   : > { %p518_p5 = pnand %p517_p3, %p511_p0 }
  0x9a   : > { %v209_v16 = vpop.permute.xlu0 %208 }
  0x9b   : > { %vm210_vm3 = vcmp.eq.s32.totalorder %v209_v16, %v206_v15 }
  0x9c   : > { %v407_v17 = vsel %vm210_vm3, 1.0, %v591_v12 }
  0x9d   : > { %437 = vmatmul.mubr.msk.f32.vlgmr.msra.gmra.mrb[0].mxu0 %vm221_vm2, %v407_v17 }
 0x170   : > { %v295_v19 = vpop.f32.mrb[0].mxu0 }
 0x171   : > { %v296_v20 = vadd.f32 %v295_v19, %v220_v18  ;;  %v438_v21 = vpop.f32.mrb[1].mxu0 }
 0x173   : > { %300 = vst.msk [vmem:[%s193_s6] sm:$0xff] %vm299_vm4, %v296_v20 }
 0x174   : > { %521 = shalt.err (!%p518_p5)
}
 0x175   : > { %s522_s23 = scalar_lea.hbm %s702_s10, 128  ;;  %s526_s28 = scalar_lea.hbm %s752_s3, 256 }
 0x176   : > { %p523_p6 = scmp.ne.s32.totalorder %s702_s10, %s522_s23  ;;  %p527_p10 = scmp.lt.u32.totalorder %s702_s10, %s752_s3 }
 0x177   : > { %p528_p11 = scmp.lt.u32.totalorder %s526_s28, %s522_s23  ;;  %p530_p13 = scmp.lt.u32.totalorder %s522_s23, %s702_s10 }
 0x178   : > { %p524_p7 = pnand %p523_p6, %p653_p4 }
 0x179   : > { %p529_p12 = por %p528_p11, %p527_p10 }
 0x17a   : > { %p525_p9 = pneg %p524_p7 }
 0x17b   : > { %p531_p0 = por %p530_p13, %p529_p12 }
 0x17d   : > { %p532_p1 = pnand %p531_p0, %p525_p9 }
 0x17f   : > { %535 = shalt.err (!%p532_p1)
}
 0x180   : > { %448 = dma.vmem_to_hbm [thread:$0]  (%p653_p4), %s704_s7, 128, %s702_s10, %s302_s11  }
 0x181 PF: > { %p454_p2 = scmp.ge.s32.totalorder %s586_s17, 2  ;;  %s328_s4 = sand.u32 1, %s566_s12  }
 0x182   : > { %s329_s5 = scalar_lea.sflag [#allocation3], %s328_s4 }
 0x183   : > { %p451_p3 = pnand %p454_p2, %p660_p8 }
 0x185   : > { %561 = dma.done.wait (!%p451_p3), %s329_s5, 128  }
 0x186   : > { %563 = vsyncadd (!%p451_p3), %s329_s5, 4294967168  ;;  %s16_s17 = sadd.s32 1, %s586_s17   ;;  %s755_s12 = smov %s570_s13 }
 0x187   : > { %p13_p5 = scmp.ge.s32.totalorder %s16_s17, 4   ;;  %s756_s13 = smov %s574_s14 }
 0x188   : > { %s757_s14 = smov %s666_s25  ;;  %s758_s15 = smov %s582_s16 }
 0x189   : > { %s759_s16 = smov %s761_s20  ;;  %15 = sbr.rel (!%p13_p5) target bundleno = 4 (0x4), region = 70 }
 0x190   :  { %334 = vsyncpa [#allocation3], 1 }
 0x191   :  { %336 = vsyncpa [#allocation3 + $0x1], 1 }

</bundles_post_ra>
